<compile_context>
chip_gen: v6e
topology: v6e:2x2x1
jax: 0.10.0
libtpu: 0.0.40
codegen_flags: <defaults>
</compile_context>

<pallas_src>
import functools

import jax
import jax.numpy as jnp
from jax import lax
from jax.experimental import pallas as pl
from jax.experimental.pallas import tpu as pltpu


# ---------------------------------------------------------------------------
# Helpers
# ---------------------------------------------------------------------------

def _round_up(x, m):
    return (x + m - 1) // m * m


_SUBLANE_MULT = {1: 32, 2: 16, 4: 8}   # rows per packed sublane group


def _row_multiple(dtype):
    return _SUBLANE_MULT.get(jnp.dtype(dtype).itemsize, 8)


@functools.lru_cache(maxsize=1)
def _vmem_limit_bytes():
    """Generation-aware scoped-VMEM budget (~3/4 of physical, <= 100 MiB)."""
    cap = 64 * 1024 * 1024
    try:
        info = pltpu.get_tpu_info()
        cap = int(getattr(info, "vmem_capacity_bytes", cap))
    except Exception:
        pass
    return int(min(cap * 3 // 4, 100 * 1024 * 1024))


def _choose_tile_n(n, tile_n, per_row_bytes, resident_bytes, vmem_limit,
                   row_mult):
    """Row-tile size: big as possible, VMEM-aware, sublane-packing aware."""
    budget = vmem_limit - 2 * resident_bytes - (4 << 20)      # headroom
    cap = budget // max(per_row_bytes, 1) if budget > 0 else row_mult
    tn = min(tile_n, cap, _round_up(n, row_mult))
    tn = max((tn // row_mult) * row_mult, row_mult)
    return tn


def _fused_fits(n, embed_dim, itemsize, temp_cols, n_labels, resident_bytes,
                vmem_limit):
    need = (n * embed_dim * itemsize       # x
            + n * temp_cols * 4            # in-kernel temporaries (h, logits)
            + n * n_labels * 4             # output
            + resident_bytes)              # weights + biases
    return 2 * need <= vmem_limit          # conservative 2x for buffering


def _logsumexp_cols(logits):
    m = jnp.max(logits, axis=0, keepdims=True)
    return m + jnp.log(jnp.sum(jnp.exp(logits - m), axis=0, keepdims=True))


def _stats_update(logits, row_ids, n_valid, m_sc, s_sc):
    """Online per-label (column) max / sum-exp update, masking padded rows."""
    lm = jnp.where(row_ids < n_valid, logits, -jnp.inf)
    m_old = m_sc[...]
    m_new = jnp.maximum(m_old, jnp.max(lm, axis=0, keepdims=True))
    s_sc[...] = (s_sc[...] * jnp.exp(m_old - m_new)
                 + jnp.sum(jnp.exp(lm - m_new), axis=0, keepdims=True))
    m_sc[...] = m_new


# ---------------------------------------------------------------------------
# Kernels — small-N fused fast path (single pallas_call, one grid step)
# ---------------------------------------------------------------------------

def _single_fused_kernel(x_ref, w_ref, b_ref, o_ref, *, n_labels):
    logits = (jnp.dot(x_ref[...], w_ref[...],
                      preferred_element_type=jnp.float32) + b_ref[...])
    logits = logits[:, :n_labels]
    o_ref[...] = (logits - _logsumexp_cols(logits)).astype(o_ref.dtype)


def _multi_fused_kernel(x_ref, w1_ref, b1_ref, w2_ref, b2_ref, o_ref,
                        *, n_labels):
    h = (jnp.dot(x_ref[...], w1_ref[...],
                 preferred_element_type=jnp.float32) + b1_ref[...])
    h = jnp.maximum(h, 0.0)
    # dropout: identity (inference / training=False)
    logits = (jnp.dot(h.astype(w2_ref.dtype), w2_ref[...],
                      preferred_element_type=jnp.float32) + b2_ref[...])
    logits = logits[:, :n_labels]
    o_ref[...] = (logits - _logsumexp_cols(logits)).astype(o_ref.dtype)


# ---------------------------------------------------------------------------
# Kernels — large-N two-pass path (pass 1: stats only; pass 2: recompute+sub)
# ---------------------------------------------------------------------------

def _single_stats_kernel(x_ref, w_ref, b_ref, norm_ref, m_sc, s_sc,
                         *, n_valid, tile_n):
    i = pl.program_id(0)

    @pl.when(i == 0)
    def _init():
        m_sc[...] = jnp.full_like(m_sc, -jnp.inf)
        s_sc[...] = jnp.zeros_like(s_sc)

    logits = (jnp.dot(x_ref[...], w_ref[...],
                      preferred_element_type=jnp.float32) + b_ref[...])
    row_ids = i * tile_n + lax.broadcasted_iota(jnp.int32, logits.shape, 0)
    _stats_update(logits, row_ids, n_valid, m_sc, s_sc)

    @pl.when(i == pl.num_programs(0) - 1)
    def _finalize():
        norm_ref[...] = m_sc[...] + jnp.log(s_sc[...])


def _multi_stats_kernel(x_ref, w1_ref, b1_ref, w2_ref, b2_ref, norm_ref,
                        m_sc, s_sc, *, n_valid, tile_n):
    i = pl.program_id(0)

    @pl.when(i == 0)
    def _init():
        m_sc[...] = jnp.full_like(m_sc, -jnp.inf)
        s_sc[...] = jnp.zeros_like(s_sc)

    h = (jnp.dot(x_ref[...], w1_ref[...],
                 preferred_element_type=jnp.float32) + b1_ref[...])
    h = jnp.maximum(h, 0.0)
    # dropout: identity (inference)
    logits = (jnp.dot(h.astype(w2_ref.dtype), w2_ref[...],
                      preferred_element_type=jnp.float32) + b2_ref[...])
    row_ids = i * tile_n + lax.broadcasted_iota(jnp.int32, logits.shape, 0)
    _stats_update(logits, row_ids, n_valid, m_sc, s_sc)

    @pl.when(i == pl.num_programs(0) - 1)
    def _finalize():
        norm_ref[...] = m_sc[...] + jnp.log(s_sc[...])


def _single_apply_kernel(norm_ref, x_ref, w_ref, b_ref, o_ref, *, n_labels):
    logits = (jnp.dot(x_ref[...], w_ref[...],
                      preferred_element_type=jnp.float32) + b_ref[...])
    norm = norm_ref[...]
    o_ref[...] = (logits[:, :n_labels] - norm[:, :n_labels]).astype(o_ref.dtype)


def _multi_apply_kernel(norm_ref, x_ref, w1_ref, b1_ref, w2_ref, b2_ref, o_ref,
                        *, n_labels):
    h = (jnp.dot(x_ref[...], w1_ref[...],
                 preferred_element_type=jnp.float32) + b1_ref[...])
    h = jnp.maximum(h, 0.0)
    # dropout: identity (inference)
    logits = (jnp.dot(h.astype(w2_ref.dtype), w2_ref[...],
                      preferred_element_type=jnp.float32) + b2_ref[...])
    norm = norm_ref[...]
    o_ref[...] = (logits[:, :n_labels] - norm[:, :n_labels]).astype(o_ref.dtype)


# ---------------------------------------------------------------------------
# Parameter preparation (one-time: transpose to (in, out) and lane-pad to 128)
# ---------------------------------------------------------------------------

def prepare_single_params(w, b, dtype=None):
    """w: (n_labels, embed_dim) PyTorch layout, b: (n_labels,)."""
    dtype = dtype or w.dtype
    n_labels, embed_dim = w.shape
    l_pad = _round_up(n_labels, 128)
    wt = jnp.zeros((embed_dim, l_pad), dtype).at[:, :n_labels].set(
        w.T.astype(dtype))
    bp = jnp.zeros((1, l_pad), jnp.float32).at[:, :n_labels].set(
        b.astype(jnp.float32))
    return wt, bp


def prepare_multi_params(w1, b1, w2, b2, dtype=None):
    """w1: (hidden, embed), w2: (n_labels, hidden) PyTorch layouts."""
    dtype = dtype or w1.dtype
    hidden, embed_dim = w1.shape
    n_labels = w2.shape[0]
    h_pad = _round_up(hidden, 128)
    l_pad = _round_up(n_labels, 128)
    w1t = jnp.zeros((embed_dim, h_pad), dtype).at[:, :hidden].set(
        w1.T.astype(dtype))
    b1p = jnp.zeros((1, h_pad), jnp.float32).at[:, :hidden].set(
        b1.astype(jnp.float32))
    w2t = jnp.zeros((h_pad, l_pad), dtype).at[:hidden, :n_labels].set(
        w2.T.astype(dtype))
    b2p = jnp.zeros((1, l_pad), jnp.float32).at[:, :n_labels].set(
        b2.astype(jnp.float32))
    return w1t, b1p, w2t, b2p


# ---------------------------------------------------------------------------
# Wrappers
# ---------------------------------------------------------------------------

@functools.partial(jax.jit, static_argnames=("embed_dim", "n_labels", "tile_n",
                                              "max_fused_rows"))
def custom_classifier_single(x, wt, bp, *, embed_dim, n_labels,
                             tile_n=1024, max_fused_rows=2048):
    """single_layer mode: log_softmax(Linear(x), dim=0)."""
    x2 = x.reshape(-1, embed_dim)                  # x.view(-1, embeddingmodel_dim)
    if x2.dtype != wt.dtype:
        x2 = x2.astype(wt.dtype)                   # e.g. bf16 weights -> bf16 MXU
    n = x2.shape[0]
    l_pad = wt.shape[1]
    itemsize = x2.dtype.itemsize
    vmem_limit = _vmem_limit_bytes()
    resident = wt.size * wt.dtype.itemsize + bp.size * 4

    # ---- small-N fast path: one call, logits never leave VMEM --------------
    if n <= max_fused_rows and _fused_fits(n, embed_dim, itemsize, l_pad,
                                           n_labels, resident, vmem_limit):
        kernel = functools.partial(_single_fused_kernel, n_labels=n_labels)
        return pl.pallas_call(
            kernel,
            out_shape=jax.ShapeDtypeStruct((n, n_labels), jnp.float32),
            grid_spec=pltpu.PrefetchScalarGridSpec(
                num_scalar_prefetch=0,
                grid=(1,),
                in_specs=[pl.BlockSpec((n, embed_dim), lambda i: (0, 0)),
                          pl.BlockSpec((embed_dim, l_pad), lambda i: (0, 0)),
                          pl.BlockSpec((1, l_pad), lambda i: (0, 0))],
                out_specs=pl.BlockSpec((n, n_labels), lambda i: (0, 0))),
            compiler_params=pltpu.CompilerParams(
                dimension_semantics=("arbitrary",),
                vmem_limit_bytes=vmem_limit),
            cost_estimate=pl.CostEstimate(
                flops=2 * n * embed_dim * l_pad + 4 * n * n_labels,
                transcendentals=n * n_labels,
                bytes_accessed=(n * embed_dim * itemsize
                                + embed_dim * l_pad * itemsize
                                + n * n_labels * 4)),
        )(x2, wt, bp)

    # ---- general two-pass path ---------------------------------------------
    per_row = 2 * embed_dim * itemsize + 2 * n_labels * 4 + l_pad * 4
    tn = _choose_tile_n(n, tile_n, per_row, resident, vmem_limit,
                        _row_multiple(x2.dtype))
    num_tiles = pl.cdiv(n, tn)

    # pass 1: stats only -> (1, l_pad) logsumexp per label column
    stats_kernel = functools.partial(_single_stats_kernel, n_valid=n, tile_n=tn)
    norm = pl.pallas_call(
        stats_kernel,
        out_shape=jax.ShapeDtypeStruct((1, l_pad), jnp.float32),
        grid_spec=pltpu.PrefetchScalarGridSpec(
            num_scalar_prefetch=0,
            grid=(num_tiles,),
            in_specs=[pl.BlockSpec((tn, embed_dim), lambda i: (i, 0)),
                      pl.BlockSpec((embed_dim, l_pad), lambda i: (0, 0)),
                      pl.BlockSpec((1, l_pad), lambda i: (0, 0))],
            out_specs=pl.BlockSpec((1, l_pad), lambda i: (0, 0)),
            scratch_shapes=[pltpu.VMEM((1, l_pad), jnp.float32),
                            pltpu.VMEM((1, l_pad), jnp.float32)]),
        compiler_params=pltpu.CompilerParams(
            dimension_semantics=("arbitrary",),   # online dim-0 softmax stats
            vmem_limit_bytes=vmem_limit),
        cost_estimate=pl.CostEstimate(
            flops=2 * n * embed_dim * l_pad + 4 * n * l_pad,
            transcendentals=n * l_pad,
            bytes_accessed=(n * embed_dim * itemsize
                            + embed_dim * l_pad * itemsize + l_pad * 4)),
    )(x2, wt, bp)

    # pass 2: recompute logits (tiny K) and subtract the norm; fully parallel
    apply_kernel = functools.partial(_single_apply_kernel, n_labels=n_labels)
    return pl.pallas_call(
        apply_kernel,
        out_shape=jax.ShapeDtypeStruct((n, n_labels), jnp.float32),
        grid_spec=pltpu.PrefetchScalarGridSpec(
            num_scalar_prefetch=0,
            grid=(num_tiles,),
            in_specs=[pl.BlockSpec((1, l_pad), lambda i: (0, 0)),
                      pl.BlockSpec((tn, embed_dim), lambda i: (i, 0)),
                      pl.BlockSpec((embed_dim, l_pad), lambda i: (0, 0)),
                      pl.BlockSpec((1, l_pad), lambda i: (0, 0))],
            out_specs=pl.BlockSpec((tn, n_labels), lambda i: (i, 0))),
        compiler_params=pltpu.CompilerParams(
            dimension_semantics=("parallel",),
            vmem_limit_bytes=vmem_limit),
        cost_estimate=pl.CostEstimate(
            flops=2 * n * embed_dim * l_pad + 2 * n * n_labels,
            transcendentals=0,
            bytes_accessed=(n * embed_dim * itemsize
                            + embed_dim * l_pad * itemsize
                            + n * n_labels * 4 + l_pad * 4)),
    )(norm, x2, wt, bp)


@functools.partial(jax.jit, static_argnames=("embed_dim", "n_labels", "tile_n",
                                              "max_fused_rows"))
def custom_classifier_multi(x, w1t, b1p, w2t, b2p, *, embed_dim, n_labels,
                            tile_n=1024, max_fused_rows=2048):
    """multi_layer mode: log_softmax(fc2(dropout(relu(fc1(x)))), dim=0)."""
    x2 = x.reshape(-1, embed_dim)                  # x.view(-1, embeddingmodel_dim)
    if x2.dtype != w1t.dtype:
        x2 = x2.astype(w1t.dtype)
    n = x2.shape[0]
    h_pad = w1t.shape[1]
    l_pad = w2t.shape[1]
    itemsize = x2.dtype.itemsize
    vmem_limit = _vmem_limit_bytes()
    w_itemsize = w1t.dtype.itemsize
    resident = (w1t.size * w_itemsize + w2t.size * w_itemsize
                + (b1p.size + b2p.size) * 4)

    # ---- small-N fast path --------------------------------------------------
    if n <= max_fused_rows and _fused_fits(n, embed_dim, itemsize,
                                           h_pad + l_pad, n_labels,
                                           resident, vmem_limit):
        kernel = functools.partial(_multi_fused_kernel, n_labels=n_labels)
        return pl.pallas_call(
            kernel,
            out_shape=jax.ShapeDtypeStruct((n, n_labels), jnp.float32),
            grid_spec=pltpu.PrefetchScalarGridSpec(
                num_scalar_prefetch=0,
                grid=(1,),
                in_specs=[pl.BlockSpec((n, embed_dim), lambda i: (0, 0)),
                          pl.BlockSpec((embed_dim, h_pad), lambda i: (0, 0)),
                          pl.BlockSpec((1, h_pad), lambda i: (0, 0)),
                          pl.BlockSpec((h_pad, l_pad), lambda i: (0, 0)),
                          pl.BlockSpec((1, l_pad), lambda i: (0, 0))],
                out_specs=pl.BlockSpec((n, n_labels), lambda i: (0, 0))),
            compiler_params=pltpu.CompilerParams(
                dimension_semantics=("arbitrary",),
                vmem_limit_bytes=vmem_limit),
            cost_estimate=pl.CostEstimate(
                flops=(2 * n * embed_dim * h_pad + 2 * n * h_pad * l_pad
                       + 4 * n * n_labels),
                transcendentals=n * n_labels,
                bytes_accessed=(n * embed_dim * itemsize
                                + (embed_dim * h_pad + h_pad * l_pad) * w_itemsize
                                + n * n_labels * 4)),
        )(x2, w1t, b1p, w2t, b2p)

    # ---- general two-pass path ---------------------------------------------
    per_row = (2 * embed_dim * itemsize + 2 * n_labels * 4
               + (h_pad + l_pad) * 4)
    tn = _choose_tile_n(n, tile_n, per_row, resident, vmem_limit,
                        _row_multiple(x2.dtype))
    num_tiles = pl.cdiv(n, tn)

    stats_kernel = functools.partial(_multi_stats_kernel, n_valid=n, tile_n=tn)
    norm = pl.pallas_call(
        stats_kernel,
        out_shape=jax.ShapeDtypeStruct((1, l_pad), jnp.float32),
        grid_spec=pltpu.PrefetchScalarGridSpec(
            num_scalar_prefetch=0,
            grid=(num_tiles,),
            in_specs=[pl.BlockSpec((tn, embed_dim), lambda i: (i, 0)),
                      pl.BlockSpec((embed_dim, h_pad), lambda i: (0, 0)),
                      pl.BlockSpec((1, h_pad), lambda i: (0, 0)),
                      pl.BlockSpec((h_pad, l_pad), lambda i: (0, 0)),
                      pl.BlockSpec((1, l_pad), lambda i: (0, 0))],
            out_specs=pl.BlockSpec((1, l_pad), lambda i: (0, 0)),
            scratch_shapes=[pltpu.VMEM((1, l_pad), jnp.float32),
                            pltpu.VMEM((1, l_pad), jnp.float32)]),
        compiler_params=pltpu.CompilerParams(
            dimension_semantics=("arbitrary",),   # online dim-0 softmax stats
            vmem_limit_bytes=vmem_limit),
        cost_estimate=pl.CostEstimate(
            flops=(2 * n * embed_dim * h_pad + 2 * n * h_pad * l_pad
                   + 4 * n * l_pad),
            transcendentals=n * l_pad,
            bytes_accessed=(n * embed_dim * itemsize
                            + (embed_dim * h_pad + h_pad * l_pad) * w_itemsize
                            + l_pad * 4)),
    )(x2, w1t, b1p, w2t, b2p)

    apply_kernel = functools.partial(_multi_apply_kernel, n_labels=n_labels)
    return pl.pallas_call(
        apply_kernel,
        out_shape=jax.ShapeDtypeStruct((n, n_labels), jnp.float32),
        grid_spec=pltpu.PrefetchScalarGridSpec(
            num_scalar_prefetch=0,
            grid=(num_tiles,),
            in_specs=[pl.BlockSpec((1, l_pad), lambda i: (0, 0)),
                      pl.BlockSpec((tn, embed_dim), lambda i: (i, 0)),
                      pl.BlockSpec((embed_dim, h_pad), lambda i: (0, 0)),
                      pl.BlockSpec((1, h_pad), lambda i: (0, 0)),
                      pl.BlockSpec((h_pad, l_pad), lambda i: (0, 0)),
                      pl.BlockSpec((1, l_pad), lambda i: (0, 0))],
            out_specs=pl.BlockSpec((tn, n_labels), lambda i: (i, 0))),
        compiler_params=pltpu.CompilerParams(
            dimension_semantics=("parallel",),
            vmem_limit_bytes=vmem_limit),
        cost_estimate=pl.CostEstimate(
            flops=(2 * n * embed_dim * h_pad + 2 * n * h_pad * l_pad
                   + 2 * n * n_labels),
            transcendentals=0,
            bytes_accessed=(n * embed_dim * itemsize
                            + (embed_dim * h_pad + h_pad * l_pad) * w_itemsize
                            + n * n_labels * 4 + l_pad * 4)),
    )(norm, x2, w1t, b1p, w2t, b2p)


# ---------------------------------------------------------------------------
# Pure-JAX references (sanity check)
# ---------------------------------------------------------------------------

def _ref_single(x, w, b, embed_dim):
    x2 = x.reshape(-1, embed_dim)
    logits = x2 @ w.T + b
    return jax.nn.log_softmax(logits, axis=0)


def _ref_multi(x, w1, b1, w2, b2, embed_dim):
    x2 = x.reshape(-1, embed_dim)
    h = jnp.maximum(x2 @ w1.T + b1, 0.0)
    logits = h @ w2.T + b2
    return jax.nn.log_softmax(logits, axis=0)


# ---------------------------------------------------------------------------
# Main
# ---------------------------------------------------------------------------

if __name__ == "__main__":
    embeddingmodel_dim = 32
    classifier_hiddenlayer_dim = 32
    dataset_n_labels = 8
    batch, seq = 4, 48          # x.view(-1, D) -> N = 192

    key = jax.random.PRNGKey(0)
    kx, kw1, kb1, kw2, kb2, kws, kbs = jax.random.split(key, 7)

    x = jax.random.normal(kx, (batch, seq, embeddingmodel_dim), dtype=jnp.float32)

    # PyTorch Linear stores weight as (out, in).
    w1 = jax.random.normal(kw1, (classifier_hiddenlayer_dim, embeddingmodel_dim),
                           dtype=jnp.float32) * 0.1
    b1 = jax.random.normal(kb1, (classifier_hiddenlayer_dim,), dtype=jnp.float32) * 0.1
    w2 = jax.random.normal(kw2, (dataset_n_labels, classifier_hiddenlayer_dim),
                           dtype=jnp.float32) * 0.1
    b2 = jax.random.normal(kb2, (dataset_n_labels,), dtype=jnp.float32) * 0.1
    ws = jax.random.normal(kws, (dataset_n_labels, embeddingmodel_dim),
                           dtype=jnp.float32) * 0.1
    bs = jax.random.normal(kbs, (dataset_n_labels,), dtype=jnp.float32) * 0.1

    # One-time parameter prep (transpose + lane-pad), outside the hot path.
    w1t, b1p, w2t, b2p = prepare_multi_params(w1, b1, w2, b2)
    wst, bsp = prepare_single_params(ws, bs)

    ref_m = _ref_multi(x, w1, b1, w2, b2, embeddingmodel_dim)
    ref_s = _ref_single(x, ws, bs, embeddingmodel_dim)
    n_rows = batch * seq

    # ---- fused fast path (N=192 fits in VMEM -> single call, single step) --
    out_m = jax.block_until_ready(custom_classifier_multi(
        x, w1t, b1p, w2t, b2p,
        embed_dim=embeddingmodel_dim, n_labels=dataset_n_labels))
    assert out_m.shape == (n_rows, dataset_n_labels)
    assert jnp.allclose(out_m, ref_m, atol=1e-5, rtol=1e-5), (
        float(jnp.max(jnp.abs(out_m - ref_m))))

    out_s = jax.block_until_ready(custom_classifier_single(
        x, wst, bsp, embed_dim=embeddingmodel_dim, n_labels=dataset_n_labels))
    assert out_s.shape == (n_rows, dataset_n_labels)
    assert jnp.allclose(out_s, ref_s, atol=1e-5, rtol=1e-5), (
        float(jnp.max(jnp.abs(out_s - ref_s))))

    # ---- forced two-pass path (tile_n=128 -> ragged last tile, masking) ----
    out_m2 = jax.block_until_ready(custom_classifier_multi(
        x, w1t, b1p, w2t, b2p,
        embed_dim=embeddingmodel_dim, n_labels=dataset_n_labels,
        tile_n=128, max_fused_rows=0))
    assert out_m2.shape == (n_rows, dataset_n_labels)
    assert jnp.allclose(out_m2, ref_m, atol=1e-5, rtol=1e-5), (
        float(jnp.max(jnp.abs(out_m2 - ref_m))))

    out_s2 = jax.block_until_ready(custom_classifier_single(
        x, wst, bsp, embed_dim=embeddingmodel_dim, n_labels=dataset_n_labels,
        tile_n=128, max_fused_rows=0))
    assert out_s2.shape == (n_rows, dataset_n_labels)
    assert jnp.allclose(out_s2, ref_s, atol=1e-5, rtol=1e-5), (
        float(jnp.max(jnp.abs(out_s2 - ref_s))))

    print("KERNEL_OK")
</pallas_src>

<mosaic_0001>
module attributes {stable_mosaic.version = 11 : i64} {
  func.func @_multi_fused_kernel(%arg0: i32, %arg1: memref<192x32xf32, #tpu.memory_space<vmem>>, %arg2: memref<32x128xf32, #tpu.memory_space<vmem>>, %arg3: memref<1x128xf32, #tpu.memory_space<vmem>>, %arg4: memref<128x128xf32, #tpu.memory_space<vmem>>, %arg5: memref<1x128xf32, #tpu.memory_space<vmem>>, %arg6: memref<192x8xf32, #tpu.memory_space<vmem>>) attributes {dimension_semantics = [#tpu.dimension_semantics<arbitrary>], iteration_bounds = array<i64: 1>, scalar_prefetch = 0 : i64, scratch_operands = 0 : i64, tpu.core_type = #tpu.core_type<tc>, window_params = [{pipeline_mode = #tpu.pipeline_mode<synchronous>, transform_indices = @transform_0, window_bounds = array<i64: 192, 32>}, {pipeline_mode = #tpu.pipeline_mode<synchronous>, transform_indices = @transform_1, window_bounds = array<i64: 32, 128>}, {pipeline_mode = #tpu.pipeline_mode<synchronous>, transform_indices = @transform_2, window_bounds = array<i64: 1, 128>}, {pipeline_mode = #tpu.pipeline_mode<synchronous>, transform_indices = @transform_3, window_bounds = array<i64: 128, 128>}, {pipeline_mode = #tpu.pipeline_mode<synchronous>, transform_indices = @transform_4, window_bounds = array<i64: 1, 128>}, {pipeline_mode = #tpu.pipeline_mode<synchronous>, transform_indices = @transform_5, window_bounds = array<i64: 192, 8>}]} {
    %c0 = arith.constant 0 : index
    %c0_0 = arith.constant 0 : index
    %0 = vector.load %arg1[%c0, %c0_0] : memref<192x32xf32, #tpu.memory_space<vmem>>, vector<192x32xf32>
    %c0_1 = arith.constant 0 : index
    %c0_2 = arith.constant 0 : index
    %1 = vector.load %arg2[%c0_1, %c0_2] : memref<32x128xf32, #tpu.memory_space<vmem>>, vector<32x128xf32>
    %cst = arith.constant dense<0.000000e+00> : vector<192x128xf32>
    %2 = tpu.matmul %0, %1, %cst {dimension_numbers = #tpu.dot_dimension_numbers<[1], [0], [0], [1], [0, 0, 1, 1], [], []>} : vector<192x32xf32>, vector<32x128xf32>, vector<192x128xf32> -> vector<192x128xf32>
    %c0_3 = arith.constant 0 : index
    %c0_4 = arith.constant 0 : index
    %3 = vector.load %arg3[%c0_3, %c0_4] : memref<1x128xf32, #tpu.memory_space<vmem>>, vector<1x128xf32>
    %4 = vector.broadcast %3 : vector<1x128xf32> to vector<192x128xf32>
    %5 = arith.addf %2, %4 : vector<192x128xf32>
    %cst_5 = arith.constant 0.000000e+00 : f32
    %6 = vector.broadcast %cst_5 : f32 to vector<192x128xf32>
    %7 = arith.maximumf %5, %6 : vector<192x128xf32>
    %c0_6 = arith.constant 0 : index
    %c0_7 = arith.constant 0 : index
    %8 = vector.load %arg4[%c0_6, %c0_7] : memref<128x128xf32, #tpu.memory_space<vmem>>, vector<128x128xf32>
    %cst_8 = arith.constant dense<0.000000e+00> : vector<192x128xf32>
    %9 = tpu.matmul %7, %8, %cst_8 {dimension_numbers = #tpu.dot_dimension_numbers<[1], [0], [0], [1], [0, 0, 1, 1], [], []>} : vector<192x128xf32>, vector<128x128xf32>, vector<192x128xf32> -> vector<192x128xf32>
    %c0_9 = arith.constant 0 : index
    %c0_10 = arith.constant 0 : index
    %10 = vector.load %arg5[%c0_9, %c0_10] : memref<1x128xf32, #tpu.memory_space<vmem>>, vector<1x128xf32>
    %11 = vector.broadcast %10 : vector<1x128xf32> to vector<192x128xf32>
    %12 = arith.addf %9, %11 : vector<192x128xf32>
    %13 = vector.extract_strided_slice %12 {offsets = [0, 0], sizes = [192, 8], strides = [1, 1]} : vector<192x128xf32> to vector<192x8xf32>
    %cst_11 = arith.constant dense<0xFF800000> : vector<8xf32>
    %14 = vector.multi_reduction <maximumf>, %13, %cst_11 [0] : vector<192x8xf32> to vector<8xf32>
    %15 = vector.shape_cast %14 : vector<8xf32> to vector<1x8xf32>
    %16 = vector.broadcast %15 : vector<1x8xf32> to vector<192x8xf32>
    %17 = arith.subf %13, %16 : vector<192x8xf32>
    %18 = math.exp %17 : vector<192x8xf32>
    %cst_12 = arith.constant dense<0.000000e+00> : vector<8xf32>
    %19 = vector.multi_reduction <add>, %18, %cst_12 [0] : vector<192x8xf32> to vector<8xf32>
    %20 = vector.shape_cast %19 : vector<8xf32> to vector<1x8xf32>
    %21 = math.log %20 : vector<1x8xf32>
    %22 = arith.addf %15, %21 : vector<1x8xf32>
    %23 = vector.broadcast %22 : vector<1x8xf32> to vector<192x8xf32>
    %24 = arith.subf %13, %23 : vector<192x8xf32>
    %c0_13 = arith.constant 0 : index
    %c0_14 = arith.constant 0 : index
    %25 = vector.load %arg6[%c0_13, %c0_14] : memref<192x8xf32, #tpu.memory_space<vmem>>, vector<192x8xf32>
    tpu.vector_store %arg6[%c0_13, %c0_14], %24 {strides = array<i32>} : memref<192x8xf32, #tpu.memory_space<vmem>>, vector<192x8xf32>,
    return
  }
  func.func @transform_0(%arg0: i32) -> (i32, i32) {
    %c0_i32 = arith.constant 0 : i32
    %c0_i32_0 = arith.constant 0 : i32
    %c0_i32_1 = arith.constant 0 : i32
    return %c0_i32, %c0_i32_0 : i32, i32
  }
  func.func @transform_1(%arg0: i32) -> (i32, i32) {
    %c0_i32 = arith.constant 0 : i32
    %c0_i32_0 = arith.constant 0 : i32
    %c0_i32_1 = arith.constant 0 : i32
    return %c0_i32, %c0_i32_0 : i32, i32
  }
  func.func @transform_2(%arg0: i32) -> (i32, i32) {
    %c0_i32 = arith.constant 0 : i32
    %c0_i32_0 = arith.constant 0 : i32
    %c0_i32_1 = arith.constant 0 : i32
    return %c0_i32, %c0_i32_0 : i32, i32
  }
  func.func @transform_3(%arg0: i32) -> (i32, i32) {
    %c0_i32 = arith.constant 0 : i32
    %c0_i32_0 = arith.constant 0 : i32
    %c0_i32_1 = arith.constant 0 : i32
    return %c0_i32, %c0_i32_0 : i32, i32
  }
  func.func @transform_4(%arg0: i32) -> (i32, i32) {
    %c0_i32 = arith.constant 0 : i32
    %c0_i32_0 = arith.constant 0 : i32
    %c0_i32_1 = arith.constant 0 : i32
    return %c0_i32, %c0_i32_0 : i32, i32
  }
  func.func @transform_5(%arg0: i32) -> (i32, i32) {
    %c0_i32 = arith.constant 0 : i32
    %c0_i32_0 = arith.constant 0 : i32
    %c0_i32_1 = arith.constant 0 : i32
    return %c0_i32, %c0_i32_0 : i32, i32
  }
}

</mosaic_0001>

<bundles_post_ra>
// kernel: custom_classifier_multi.1
= control target key start
LH: loop header
LB: loop body
LE: loop exit
PB: predicated region body
PF: predicated region fallthrough
CT: control target
= control target key end

     0   :  { %vm55_vm0 = vcmask 261120   ;;  %vm545_vm1 = vcmask 64512   ;;  %s1602_s1 = inlined_call_operand.vmem [shape: f32[32,128], index: 1, kind: input, shape index: {}]   ;;  %s1603_s0 = inlined_call_operand.vmem [shape: f32[192,32], index: 0, kind: input, shape index: {}]   ;;  %s1604_s3 = inlined_call_operand.vmem [shape: f32[128,128], index: 3, kind: input, shape index: {}]   ;;  %s1605_s2 = inlined_call_operand.vmem [shape: f32[1,128], index: 2, kind: input, shape index: {}]   ;;  %s1606_s4 = inlined_call_operand.vmem [shape: f32[1,128], index: 4, kind: input, shape index: {}]   ;;  %s1607_s5 = inlined_call_operand.vmem [shape: f32[192,8], index: 5, kind: output, shape index: {}]  }
   0x1   :  { %v47_v0 = vld [vmem:[%s1602_s1 + $0x18] sm:$0xff]  ;;  %v46_v1 = vld [vmem:[%s1602_s1 + $0x10] sm:$0xff]  ;;  %v20_v2 = vld [vmem:[%s1603_s0] sm:$0xff] }
   0x2   :  { %873 = vmatprep.subr.mxu0 %v47_v0  ;;  %v45_v3 = vld [vmem:[%s1602_s1 + $0x8] sm:$0xff]  ;;  %881 = vmatprep.mubr.msk.f32.mxu0 %vm55_vm0, %v20_v2  ;;  %v44_v4 = vld [vmem:[%s1602_s1] sm:$0xff]  ;;  %v22_v6 = vld [vmem:[%s1603_s0 + $0x10] sm:$0xff] }
   0x3   :  { %874 = vmatpush3.msra.mxu0 %v47_v0  ;;  %v21_v5 = vld [vmem:[%s1603_s0 + $0x8] sm:$0xff]  ;;  %v352_v7 = vld [vmem:[%s1604_s3 + $0x78] sm:$0xff]  ;;  %v351_v8 = vld [vmem:[%s1604_s3 + $0x70] sm:$0xff] }
   0x4   :  { %875 = vmatprep.subr.mxu0 %v46_v1  ;;  %v23_v9 = vld [vmem:[%s1603_s0 + $0x18] sm:$0xff]  ;;  %v24_v10 = vld [vmem:[%s1603_s0 + $0x20] sm:$0xff]  ;;  %985 = vmatprep.subr.mxu1 %v352_v7  ;;  %v350_v11 = vld [vmem:[%s1604_s3 + $0x68] sm:$0xff] }
   0x5   :  { %876 = vmatpush3.msra.mxu0 %v46_v1  ;;  %1001 = vmatpush3.msra.mxu1 %v352_v7  ;;  %v25_v12 = vld [vmem:[%s1603_s0 + $0x28] sm:$0xff]  ;;  %v349_v13 = vld [vmem:[%s1604_s3 + $0x60] sm:$0xff]  ;;  %v26_v14 = vld [vmem:[%s1603_s0 + $0x30] sm:$0xff] }
   0x6   :  { %877 = vmatprep.subr.mxu0 %v45_v3  ;;  %986 = vmatprep.subr.mxu1 %v351_v8  ;;  %v348_v15 = vld [vmem:[%s1604_s3 + $0x58] sm:$0xff]  ;;  %v347_v17 = vld [vmem:[%s1604_s3 + $0x50] sm:$0xff]  ;;  %v28_v18 = vld [vmem:[%s1603_s0 + $0x40] sm:$0xff] }
   0x7   :  { %878 = vmatpush3.msra.mxu0 %v45_v3  ;;  %1002 = vmatpush3.msra.mxu1 %v351_v8  ;;  %v27_v16 = vld [vmem:[%s1603_s0 + $0x38] sm:$0xff]  ;;  %v346_v19 = vld [vmem:[%s1604_s3 + $0x48] sm:$0xff]  ;;  %v345_v21 = vld [vmem:[%s1604_s3 + $0x40] sm:$0xff] }
   0x8   :  { %879 = vmatprep.subr.mxu0 %v44_v4  ;;  %987 = vmatprep.subr.mxu1 %v350_v11  ;;  %v29_v20 = vld [vmem:[%s1603_s0 + $0x48] sm:$0xff]  ;;  %v30_v22 = vld [vmem:[%s1603_s0 + $0x50] sm:$0xff]  ;;  %v344_v23 = vld [vmem:[%s1604_s3 + $0x38] sm:$0xff] }
   0x9   :  { %880 = vmatpush3.msra.mxu0 %v44_v4  ;;  %1003 = vmatpush3.msra.mxu1 %v350_v11  ;;  %v31_v24 = vld [vmem:[%s1603_s0 + $0x58] sm:$0xff]  ;;  %v343_v25 = vld [vmem:[%s1604_s3 + $0x30] sm:$0xff]  ;;  %v32_v26 = vld [vmem:[%s1603_s0 + $0x60] sm:$0xff] }
   0xa   :  { %882 = vmatmul.mubr.msk.f32.vlgmr.msra.gmra.mxu0 %vm55_vm0, %v21_v5  ;;  %917 = vmatprep.subr.mxu0 %v352_v7  ;;  %v342_v27 = vld [vmem:[%s1604_s3 + $0x28] sm:$0xff]  ;;  %v341_v29 = vld [vmem:[%s1604_s3 + $0x20] sm:$0xff]  ;;  %v34_v30 = vld [vmem:[%s1603_s0 + $0x70] sm:$0xff] }
   0xb   :  { %884 = vmatprep.mubr.msk.f32.mxu0 %vm55_vm0, %v22_v6  ;;  %918 = vmatpush3.msra.mxu0 %v352_v7  ;;  %v33_v28 = vld [vmem:[%s1603_s0 + $0x68] sm:$0xff]  ;;  %v35_v31 = vld [vmem:[%s1603_s0 + $0x78] sm:$0xff]  ;;  %v36_v32 = vld [vmem:[%s1603_s0 + $0x80] sm:$0xff] }
   0xc   :  { %919 = vmatprep.subr.mxu0 %v351_v8  ;;  %988 = vmatprep.subr.mxu1 %v349_v13  ;;  %v37_v33 = vld [vmem:[%s1603_s0 + $0x88] sm:$0xff]  ;;  %v38_v34 = vld [vmem:[%s1603_s0 + $0x90] sm:$0xff]  ;;  %v39_v35 = vld [vmem:[%s1603_s0 + $0x98] sm:$0xff] }
   0xd   :  { %920 = vmatpush3.msra.mxu0 %v351_v8  ;;  %1004 = vmatpush3.msra.mxu1 %v349_v13  ;;  %v40_v36 = vld [vmem:[%s1603_s0 + $0xa0] sm:$0xff]  ;;  %v41_v37 = vld [vmem:[%s1603_s0 + $0xa8] sm:$0xff]  ;;  %v42_v38 = vld [vmem:[%s1603_s0 + $0xb0] sm:$0xff] }
   0xe   :  { %885 = vmatmul.mubr.msk.f32.gmra.mxu0 %vm55_vm0, %v23_v9  ;;  %921 = vmatprep.subr.mxu0 %v350_v11  ;;  %v43_v39 = vld [vmem:[%s1603_s0 + $0xb8] sm:$0xff]  ;;  %v339_v41 = vld [vmem:[%s1604_s3 + $0x10] sm:$0xff]  ;;  %v338_v42 = vld [vmem:[%s1604_s3 + $0x8] sm:$0xff] }
   0xf   :  { %887 = vmatprep.mubr.msk.f32.mxu0 %vm55_vm0, %v24_v10  ;;  %922 = vmatpush3.msra.mxu0 %v350_v11  ;;  %v340_v40 = vld [vmem:[%s1604_s3 + $0x18] sm:$0xff]  ;;  %v337_v43 = vld [vmem:[%s1604_s3] sm:$0xff] }
  0x10   :  { %923 = vmatprep.subr.mxu0 %v349_v13  ;;  %989 = vmatprep.subr.mxu1 %v348_v15  ;;  %v1256_v44 = vld [vmem:[%s1605_s2] ss:$0 sm:$0xff] }
  0x11   :  { %924 = vmatpush3.msra.mxu0 %v349_v13  ;;  %1005 = vmatpush3.msra.mxu1 %v348_v15 }
  0x12   :  { %888 = vmatmul.mubr.msk.f32.gmra.mxu0 %vm55_vm0, %v25_v12  ;;  %925 = vmatprep.subr.mxu0 %v348_v15 }
  0x13   :  { %890 = vmatprep.mubr.msk.f32.mxu0 %vm55_vm0, %v26_v14  ;;  %926 = vmatpush3.msra.mxu0 %v348_v15 }
  0x14   :  { %927 = vmatprep.subr.mxu0 %v347_v17  ;;  %990 = vmatprep.subr.mxu1 %v347_v17 }
  0x15   :  { %928 = vmatpush3.msra.mxu0 %v347_v17  ;;  %1006 = vmatpush3.msra.mxu1 %v347_v17 }
  0x16   :  { %891 = vmatmul.mubr.msk.f32.gmra.mxu0 %vm55_vm0, %v27_v16  ;;  %929 = vmatprep.subr.mxu0 %v346_v19 }
  0x17   :  { %893 = vmatprep.mubr.msk.f32.mxu0 %vm55_vm0, %v28_v18  ;;  %930 = vmatpush3.msra.mxu0 %v346_v19 }
  0x18   :  { %931 = vmatprep.subr.mxu0 %v345_v21  ;;  %991 = vmatprep.subr.mxu1 %v346_v19 }
  0x19   :  { %932 = vmatpush3.msra.mxu0 %v345_v21  ;;  %1007 = vmatpush3.msra.mxu1 %v346_v19 }
  0x1a   :  { %894 = vmatmul.mubr.msk.f32.gmra.mxu0 %vm55_vm0, %v29_v20  ;;  %933 = vmatprep.subr.mxu0 %v344_v23 }
  0x1b   :  { %896 = vmatprep.mubr.msk.f32.mxu0 %vm55_vm0, %v30_v22  ;;  %934 = vmatpush3.msra.mxu0 %v344_v23 }
  0x1c   :  { %935 = vmatprep.subr.mxu0 %v343_v25  ;;  %992 = vmatprep.subr.mxu1 %v345_v21 }
  0x1d   :  { %936 = vmatpush3.msra.mxu0 %v343_v25  ;;  %1008 = vmatpush3.msra.mxu1 %v345_v21 }
  0x1e   :  { %897 = vmatmul.mubr.msk.f32.gmra.mxu0 %vm55_vm0, %v31_v24  ;;  %937 = vmatprep.subr.mxu0 %v342_v27 }
  0x1f   :  { %899 = vmatprep.mubr.msk.f32.mxu0 %vm55_vm0, %v32_v26  ;;  %938 = vmatpush3.msra.mxu0 %v342_v27 }
  0x20   :  { %939 = vmatprep.subr.mxu0 %v341_v29  ;;  %993 = vmatprep.subr.mxu1 %v344_v23 }
  0x21   :  { %940 = vmatpush3.msra.mxu0 %v341_v29  ;;  %1009 = vmatpush3.msra.mxu1 %v344_v23 }
  0x22   :  { %900 = vmatmul.mubr.msk.f32.gmra.mxu0 %vm55_vm0, %v33_v28  ;;  %994 = vmatprep.subr.mxu1 %v343_v25 }
  0x23   :  { %902 = vmatprep.mubr.msk.f32.mxu0 %vm55_vm0, %v34_v30  ;;  %1010 = vmatpush3.msra.mxu1 %v343_v25 }
  0x24   :  { %995 = vmatprep.subr.mxu1 %v342_v27  ;;  %941 = vmatprep.subr.mxu0 %v340_v40 }
  0x25   :  { %1011 = vmatpush3.msra.mxu1 %v342_v27  ;;  %942 = vmatpush3.msra.mxu0 %v340_v40 }
  0x26   :  { %903 = vmatmul.mubr.msk.f32.gmra.mxu0 %vm55_vm0, %v35_v31  ;;  %996 = vmatprep.subr.mxu1 %v341_v29 }
  0x27   :  { %905 = vmatprep.mubr.msk.f32.mxu0 %vm55_vm0, %v36_v32  ;;  %1012 = vmatpush3.msra.mxu1 %v341_v29 }
  0x28   :  { %997 = vmatprep.subr.mxu1 %v340_v40  ;;  %943 = vmatprep.subr.mxu0 %v339_v41 }
  0x29   :  { %1013 = vmatpush3.msra.mxu1 %v340_v40  ;;  %944 = vmatpush3.msra.mxu0 %v339_v41 }
  0x2a   :  { %906 = vmatmul.mubr.msk.f32.gmra.mxu0 %vm55_vm0, %v37_v33  ;;  %998 = vmatprep.subr.mxu1 %v339_v41 }
  0x2b   :  { %908 = vmatprep.mubr.msk.f32.mxu0 %vm55_vm0, %v38_v34  ;;  %1014 = vmatpush3.msra.mxu1 %v339_v41 }
  0x2c   :  { %945 = vmatprep.subr.mxu0 %v338_v42  ;;  %999 = vmatprep.subr.mxu1 %v338_v42 }
  0x2d   :  { %946 = vmatpush3.msra.mxu0 %v338_v42  ;;  %1015 = vmatpush3.msra.mxu1 %v338_v42 }
  0x2e   :  { %909 = vmatmul.mubr.msk.f32.gmra.mxu0 %vm55_vm0, %v39_v35  ;;  %947 = vmatprep.subr.mxu0 %v337_v43 }
  0x2f   :  { %911 = vmatprep.mubr.msk.f32.mxu0 %vm55_vm0, %v40_v36  ;;  %1000 = vmatprep.subr.mxu1 %v337_v43 }
  0x30   :  { %948 = vmatpush3.msra.mxu0 %v337_v43  ;;  %1016 = vmatpush3.msra.mxu1 %v337_v43 }
  0x32   :  { %912 = vmatmul.mubr.msk.f32.gmra.mxu0 %vm55_vm0, %v41_v37 }
  0x33   :  { %914 = vmatprep.mubr.msk.f32.mxu0 %vm55_vm0, %v42_v38 }
  0x36   :  { %915 = vmatmul.mubr.msk.f32.gmra.mxu0 %vm55_vm0, %v43_v39 }
  0xca   :  { %v883_v45 = vpop.f32.mrf.mxu0 }
  0xcb   :  { %v200_v46 = vadd.f32 %v883_v45, %v1256_v44 }
  0xcc   :  { %v194_v47 = vpop.f32.mrf.mxu0 }
  0xcd   :  { %v195_v48 = vadd.f32 %v1256_v44, %v194_v47  ;;  %v314_v51 = vmax.f32 %v200_v46, 0.0 }
  0xce   :  { %v886_v49 = vpop.f32.mrf.mxu0 }
  0xcf   :  { %v313_v50 = vmax.f32 %v195_v48, 0.0  ;;  %v210_v52 = vadd.f32 %v886_v49, %v1256_v44 }
  0xd0   :  { %v204_v53 = vpop.f32.mrf.mxu0 }
  0xd1   :  { %v205_v54 = vadd.f32 %v1256_v44, %v204_v53  ;;  %949 = vmatprep.mubr.f32.mxu0 %v313_v50  ;;  %v316_v57 = vmax.f32 %v210_v52, 0.0 }
  0xd2   :  { %v889_v55 = vpop.f32.mrf.mxu0  ;;  %950 = vmatmul.mubr.f32.vlgmr.msra.gmra.mxu0 %v314_v51 }
  0xd3   :  { %v315_v56 = vmax.f32 %v205_v54, 0.0  ;;  %v220_v58 = vadd.f32 %v889_v55, %v1256_v44 }
  0xd4   :  { %v214_v59 = vpop.f32.mrf.mxu0 }
  0xd5   :  { %v215_v60 = vadd.f32 %v1256_v44, %v214_v59  ;;  %952 = vmatprep.mubr.f32.mxu0 %v315_v56  ;;  %v318_v63 = vmax.f32 %v220_v58, 0.0 }
  0xd6   :  { %v892_v61 = vpop.f32.mrf.mxu0  ;;  %953 = vmatmul.mubr.f32.gmra.mxu0 %v316_v57 }
  0xd7   :  { %v317_v62 = vmax.f32 %v215_v60, 0.0  ;;  %v230_v0 = vadd.f32 %v892_v61, %v1256_v44 }
  0xd8   :  { %v224_v1 = vpop.f32.mrf.mxu0 }
  0xd9   :  { %955 = vmatprep.mubr.f32.mxu0 %v317_v62  ;;  %v225_v2 = vadd.f32 %v1256_v44, %v224_v1  ;;  %v320_v5 = vmax.f32 %v230_v0, 0.0 }
  0xda   :  { %v895_v3 = vpop.f32.mrf.mxu0  ;;  %956 = vmatmul.mubr.f32.gmra.mxu0 %v318_v63 }
  0xdb   :  { %v319_v4 = vmax.f32 %v225_v2, 0.0  ;;  %v240_v6 = vadd.f32 %v895_v3, %v1256_v44 }
  0xdc   :  { %v234_v7 = vpop.f32.mrf.mxu0 }
  0xdd   :  { %v235_v8 = vadd.f32 %v1256_v44, %v234_v7  ;;  %958 = vmatprep.mubr.f32.mxu1 %v319_v4  ;;  %v322_v11 = vmax.f32 %v240_v6, 0.0 }
  0xde   :  { %v898_v9 = vpop.f32.mrf.mxu0  ;;  %959 = vmatmul.mubr.f32.vlgmr.msra.gmra.mxu1 %v320_v5 }
  0xdf   :  { %v321_v10 = vmax.f32 %v235_v8, 0.0  ;;  %v250_v12 = vadd.f32 %v898_v9, %v1256_v44 }
  0xe0   :  { %v244_v13 = vpop.f32.mrf.mxu0 }
  0xe1   :  { %v245_v14 = vadd.f32 %v1256_v44, %v244_v13  ;;  %961 = vmatprep.mubr.f32.mxu1 %v321_v10  ;;  %v324_v17 = vmax.f32 %v250_v12, 0.0 }
  0xe2   :  { %v901_v15 = vpop.f32.mrf.mxu0  ;;  %962 = vmatmul.mubr.f32.gmra.mxu1 %v322_v11 }
  0xe3   :  { %v323_v16 = vmax.f32 %v245_v14, 0.0  ;;  %v260_v18 = vadd.f32 %v901_v15, %v1256_v44 }
  0xe4   :  { %v254_v19 = vpop.f32.mrf.mxu0 }
  0xe5   :  { %v255_v20 = vadd.f32 %v1256_v44, %v254_v19  ;;  %964 = vmatprep.mubr.f32.mxu1 %v323_v16  ;;  %v326_v23 = vmax.f32 %v260_v18, 0.0 }
  0xe6   :  { %v904_v21 = vpop.f32.mrf.mxu0  ;;  %965 = vmatmul.mubr.f32.gmra.mxu1 %v324_v17 }
  0xe7   :  { %v325_v22 = vmax.f32 %v255_v20, 0.0  ;;  %v270_v24 = vadd.f32 %v904_v21, %v1256_v44 }
  0xe8   :  { %v264_v25 = vpop.f32.mrf.mxu0 }
  0xe9   :  { %v265_v26 = vadd.f32 %v1256_v44, %v264_v25  ;;  %967 = vmatprep.mubr.f32.mxu1 %v325_v22  ;;  %v328_v29 = vmax.f32 %v270_v24, 0.0 }
  0xea   :  { %v907_v27 = vpop.f32.mrf.mxu0  ;;  %968 = vmatmul.mubr.f32.gmra.mxu1 %v326_v23 }
  0xeb   :  { %v327_v28 = vmax.f32 %v265_v26, 0.0  ;;  %v280_v30 = vadd.f32 %v907_v27, %v1256_v44 }
  0xec   :  { %v274_v31 = vpop.f32.mrf.mxu0 }
  0xed   :  { %v275_v32 = vadd.f32 %v1256_v44, %v274_v31  ;;  %970 = vmatprep.mubr.f32.mxu1 %v327_v28  ;;  %v330_v35 = vmax.f32 %v280_v30, 0.0 }
  0xee   :  { %v910_v33 = vpop.f32.mrf.mxu0  ;;  %971 = vmatmul.mubr.f32.gmra.mxu1 %v328_v29 }
  0xef   :  { %v329_v34 = vmax.f32 %v275_v32, 0.0  ;;  %v290_v36 = vadd.f32 %v910_v33, %v1256_v44 }
  0xf0   :  { %v284_v37 = vpop.f32.mrf.mxu0 }
  0xf1   :  { %v285_v38 = vadd.f32 %v1256_v44, %v284_v37  ;;  %973 = vmatprep.mubr.f32.mxu1 %v329_v34  ;;  %v332_v41 = vmax.f32 %v290_v36, 0.0 }
  0xf2   :  { %v913_v39 = vpop.f32.mrf.mxu0  ;;  %974 = vmatmul.mubr.f32.gmra.mxu1 %v330_v35 }
  0xf3   :  { %v331_v40 = vmax.f32 %v285_v38, 0.0  ;;  %v300_v42 = vadd.f32 %v913_v39, %v1256_v44 }
  0xf4   :  { %v294_v43 = vpop.f32.mrf.mxu0 }
  0xf5   :  { %v295_v45 = vadd.f32 %v1256_v44, %v294_v43  ;;  %976 = vmatprep.mubr.f32.mxu1 %v331_v40  ;;  %v334_v48 = vmax.f32 %v300_v42, 0.0 }
  0xf6   :  { %v916_v46 = vpop.f32.mrf.mxu0  ;;  %977 = vmatmul.mubr.f32.gmra.mxu1 %v332_v41 }
  0xf7   :  { %v333_v47 = vmax.f32 %v295_v45, 0.0  ;;  %v310_v49 = vadd.f32 %v916_v46, %v1256_v44 }
  0xf8   :  { %v304_v50 = vpop.f32.mrf.mxu0 }
  0xf9   :  { %v305_v51 = vadd.f32 %v1256_v44, %v304_v50  ;;  %979 = vmatprep.mubr.f32.mxu1 %v333_v47  ;;  %v336_v53 = vmax.f32 %v310_v49, 0.0  ;;  %v1285_v44 = vld [vmem:[%s1606_s4] ss:$0 sm:$0xff] }
  0xfa   :  { %980 = vmatmul.mubr.f32.gmra.mxu1 %v334_v48 }
  0xfb   :  { %v335_v52 = vmax.f32 %v305_v51, 0.0 }
  0xfd   :  { %982 = vmatprep.mubr.f32.mxu1 %v335_v52 }
  0xfe   :  { %983 = vmatmul.mubr.f32.gmra.mxu1 %v336_v53 }
 0x192   :  { %v951_v54 = vpop.f32.mrf.mxu0 }
 0x193   :  { %v1288_v5 = vadd.f32 %v951_v54, %v1285_v44 }
 0x194   :  { %v426_v55 = vpop.f32.mrf.mxu0 }
 0x195   :  { %v1297_v9 = vadd.f32 %v1285_v44, %v426_v55  ;;  %v547_v15 = vsel %vm545_vm1, %v1288_v5, -inf }
 0x196   :  { %v954_v58 = vpop.f32.mrf.mxu0 }
 0x197   :  { %v1300_v10 = vadd.f32 %v954_v58, %v1285_v44  ;;  %v546_v21 = vsel %vm545_vm1, %v1297_v9, -inf }
 0x198   :  { %v436_v61 = vpop.f32.mrf.mxu0 }
 0x199   :  { %v1303_v11 = vadd.f32 %v1285_v44, %v436_v61  ;;  %v549_v22 = vsel %vm545_vm1, %v1300_v10, -inf }
 0x19a   :  { %v957_v0 = vpop.f32.mrf.mxu0 }
 0x19b   :  { %v1291_v7 = vadd.f32 %v957_v0, %v1285_v44  ;;  %v548_v23 = vsel %vm545_vm1, %v1303_v11, -inf }
 0x19c   :  { %v446_v3 = vpop.f32.mrf.mxu0 }
 0x19d   :  { %v1294_v8 = vadd.f32 %v1285_v44, %v446_v3  ;;  %v552_v17 = vsel %vm545_vm1, %v1291_v7, -inf }
 0x19e   :  { %v960_v56 = vpop.f32.mrf.mxu1  ;;  %v553_v30 = vmax.f32 %v547_v15, %v552_v17 }
 0x19f   :  { %v1306_v13 = vadd.f32 %v960_v56, %v1285_v44  ;;  %v550_v18 = vsel %vm545_vm1, %v1294_v8, -inf }
 0x1a0   :  { %v456_v57 = vpop.f32.mrf.mxu1  ;;  %v551_v31 = vmax.f32 %v546_v21, %v550_v18 }
 0x1a1   :  { %v1309_v14 = vadd.f32 %v1285_v44, %v456_v57  ;;  %v556_v26 = vsel %vm545_vm1, %v1306_v13, -inf }
 0x1a2   :  { %v963_v59 = vpop.f32.mrf.mxu1  ;;  %v557_v39 = vmax.f32 %v549_v22, %v556_v26 }
 0x1a3   :  { %v1318_v19 = vadd.f32 %v963_v59, %v1285_v44  ;;  %v554_v27 = vsel %vm545_vm1, %v1309_v14, -inf }
 0x1a4   :  { %v466_v60 = vpop.f32.mrf.mxu1  ;;  %v555_v40 = vmax.f32 %v548_v23, %v554_v27 }
 0x1a5   :  { %v1321_v20 = vadd.f32 %v1285_v44, %v466_v60  ;;  %v560_v35 = vsel %vm545_vm1, %v1318_v19, -inf }
 0x1a6   :  { %v966_v62 = vpop.f32.mrf.mxu1  ;;  %v561_v49 = vmax.f32 %v553_v30, %v560_v35 }
 0x1a7   :  { %v1330_v24 = vadd.f32 %v966_v62, %v1285_v44  ;;  %v558_v36 = vsel %vm545_vm1, %v1321_v20, -inf }
 0x1a8   :  { %v476_v63 = vpop.f32.mrf.mxu1  ;;  %v559_v50 = vmax.f32 %v551_v31, %v558_v36 }
 0x1a9   :  { %v1337_v28 = vadd.f32 %v1285_v44, %v476_v63  ;;  %v564_v41 = vsel %vm545_vm1, %v1330_v24, -inf }
 0x1aa   :  { %v969_v1 = vpop.f32.mrf.mxu1  ;;  %v565_v58 = vmax.f32 %v557_v39, %v564_v41 }
 0x1ab   :  { %v1343_v32 = vadd.f32 %v969_v1, %v1285_v44  ;;  %v562_v45 = vsel %vm545_vm1, %v1337_v28, -inf }
 0x1ac   :  { %v486_v2 = vpop.f32.mrf.mxu1  ;;  %v563_v59 = vmax.f32 %v555_v40, %v562_v45 }
 0x1ad   :  { %v1340_v29 = vadd.f32 %v1285_v44, %v486_v2  ;;  %v568_v51 = vsel %vm545_vm1, %v1343_v32, -inf }
 0x1ae   :  { %v972_v4 = vpop.f32.mrf.mxu1  ;;  %v569_v3 = vmax.f32 %v561_v49, %v568_v51 }
 0x1af   :  { %v1346_v33 = vadd.f32 %v972_v4, %v1285_v44  ;;  %v566_v46 = vsel %vm545_vm1, %v1340_v29, -inf }
 0x1b0   :  { %v496_v6 = vpop.f32.mrf.mxu1  ;;  %v567_v60 = vmax.f32 %v559_v50, %v566_v46 }
 0x1b1   :  { %v1353_v37 = vadd.f32 %v1285_v44, %v496_v6  ;;  %v572_v52 = vsel %vm545_vm1, %v1346_v33, -inf }
 0x1b2   :  { %v975_v12 = vpop.f32.mrf.mxu1  ;;  %v573_v4 = vmax.f32 %v565_v58, %v572_v52 }
 0x1b3   :  { %v1361_v42 = vadd.f32 %v975_v12, %v1285_v44  ;;  %v570_v54 = vsel %vm545_vm1, %v1353_v37, -inf }
 0x1b4   :  { %v506_v16 = vpop.f32.mrf.mxu1  ;;  %v571_v6 = vmax.f32 %v563_v59, %v570_v54 }
 0x1b5   :  { %v1356_v38 = vadd.f32 %v1285_v44, %v506_v16  ;;  %v576_v61 = vsel %vm545_vm1, %v1361_v42, -inf }
 0x1b6   :  { %v978_v25 = vpop.f32.mrf.mxu1  ;;  %v577_v21 = vmax.f32 %v569_v3, %v576_v61 }
 0x1b7   :  { %v1368_v47 = vadd.f32 %v978_v25, %v1285_v44  ;;  %v574_v55 = vsel %vm545_vm1, %v1356_v38, -inf }
 0x1b8   :  { %v516_v34 = vpop.f32.mrf.mxu1  ;;  %v575_v12 = vmax.f32 %v567_v60, %v574_v55 }
 0x1b9   :  { %v1371_v48 = vadd.f32 %v1285_v44, %v516_v34  ;;  %v580_v63 = vsel %vm545_vm1, %v1368_v47, -inf }
 0x1ba   :  { %v981_v43 = vpop.f32.mrf.mxu1  ;;  %v581_v22 = vmax.f32 %v573_v4, %v580_v63 }
 0x1bb   :  { %v1382_v56 = vadd.f32 %v981_v43, %v1285_v44  ;;  %v578_v0 = vsel %vm545_vm1, %v1371_v48, -inf }
 0x1bc   :  { %v526_v53 = vpop.f32.mrf.mxu1  ;;  %v579_v23 = vmax.f32 %v571_v6, %v578_v0 }
 0x1bd   :  { %v1385_v57 = vadd.f32 %v1285_v44, %v526_v53  ;;  %v584_v16 = vsel %vm545_vm1, %v1382_v56, -inf }
 0x1be   :  { %v984_v62 = vpop.f32.mrf.mxu1  ;;  %v585_v27 = vmax.f32 %v577_v21, %v584_v16 }
 0x1bf   :  { %v582_v1 = vsel %vm545_vm1, %v1385_v57, -inf  ;;  %v1396_v2 = vadd.f32 %v984_v62, %v1285_v44 }
 0x1c0   :  { %v536_v15 = vpop.f32.mrf.mxu1  ;;  %v583_v25 = vmax.f32 %v575_v12, %v582_v1 }
 0x1c1   :  { %v588_v17 = vsel %vm545_vm1, %v1396_v2, -inf  ;;  %v1403_v18 = vadd.f32 %v1285_v44, %v536_v15 }
 0x1c2   :  { %v589_v30 = vmax.f32 %v581_v22, %v588_v17  ;;  %v590_v34 = vmax.f32 %v583_v25, %v585_v27 }
 0x1c3   :  { %v586_v26 = vsel %vm545_vm1, %v1403_v18, -inf }
 0x1c4   :  { %v587_v31 = vmax.f32 %v579_v23, %v586_v26 }
 0x1c6   :  { %v591_v35 = vmax.f32 %v587_v31, %v589_v30 }
 0x1c8   :  { %v592_v36 = vmax.f32 %v590_v34, %v591_v35 }
 0x1ca   :  { %v593_v39 = vrot.slane %v592_v36, 4 }
 0x1cc   :  { %v594_v40 = vmax.f32 %v592_v36, %v593_v39 }
 0x1ce   :  { %v595_v41 = vrot.slane %v594_v40, 2 }
 0x1d0   :  { %v596_v43 = vmax.f32 %v594_v40, %v595_v41 }
 0x1d2   :  { %v597_v45 = vrot.slane %v596_v43, 1 }
 0x1d4   :  { %v1407_v44 = vmax.f32 %v596_v43, %v597_v45 }
 0x1d6   :  { %v599_v46 = vsub.f32 %v1297_v9, %v1407_v44  ;;  %v600_v49 = vsub.f32 %v1288_v5, %v1407_v44  ;;  %v601_v50 = vsub.f32 %v1303_v11, %v1407_v44  ;;  %v602_v51 = vsub.f32 %v1300_v10, %v1407_v44 }
 0x1d7   :  { %v603_v52 = vsub.f32 %v1294_v8, %v1407_v44  ;;  %v604_v58 = vsub.f32 %v1291_v7, %v1407_v44  ;;  %v605_v60 = vsub.f32 %v1309_v14, %v1407_v44  ;;  %v606_v62 = vsub.f32 %v1306_v13, %v1407_v44 }
 0x1d8   :  { %v623_v53 = vmul.f32 1.442695, %v599_v46  ;;  %v625_v54 = vmul.f32 1.442695, %v600_v49  ;;  %v627_v55 = vmul.f32 1.442695, %v601_v50  ;;  %v607_v0 = vsub.f32 %v1321_v20, %v1407_v44 }
 0x1d9   :  { %v629_v59 = vmul.f32 1.442695, %v602_v51  ;;  %v631_v61 = vmul.f32 1.442695, %v603_v52  ;;  %v633_v63 = vmul.f32 1.442695, %v604_v58  ;;  %v608_v3 = vsub.f32 %v1318_v19, %v1407_v44 }
 0x1da   :  { %1017 = vpow2.f32 %v623_v53  ;;  %v635_v1 = vmul.f32 1.442695, %v605_v60  ;;  %v637_v4 = vmul.f32 1.442695, %v606_v62  ;;  %v609_v6 = vsub.f32 %v1337_v28, %v1407_v44 }
 0x1db   :  { %1019 = vpow2.f32 %v625_v54  ;;  %v639_v12 = vmul.f32 1.442695, %v607_v0  ;;  %v610_v15 = vsub.f32 %v1330_v24, %v1407_v44  ;;  %v641_v16 = vmul.f32 1.442695, %v608_v3 }
 0x1dc   :  { %1021 = vpow2.f32 %v627_v55  ;;  %v611_v21 = vsub.f32 %v1340_v29, %v1407_v44  ;;  %v643_v22 = vmul.f32 1.442695, %v609_v6  ;;  %v612_v27 = vsub.f32 %v1343_v32, %v1407_v44 }
 0x1dd   :  { %1023 = vpow2.f32 %v629_v59  ;;  %v645_v30 = vmul.f32 1.442695, %v610_v15  ;;  %v613_v36 = vsub.f32 %v1353_v37, %v1407_v44  ;;  %v614_v45 = vsub.f32 %v1346_v33, %v1407_v44 }
 0x1de   :  { %1025 = vpow2.f32 %v631_v61  ;;  %v647_v39 = vmul.f32 1.442695, %v611_v21  ;;  %v649_v46 = vmul.f32 1.442695, %v612_v27  ;;  %v615_v52 = vsub.f32 %v1356_v38, %v1407_v44 }
 0x1df   :  { %1027 = vpow2.f32 %v633_v63  ;;  %v651_v53 = vmul.f32 1.442695, %v613_v36  ;;  %v616_v59 = vsub.f32 %v1361_v42, %v1407_v44  ;;  %v653_v60 = vmul.f32 1.442695, %v614_v45 }
 0x1e0   :  { %1029 = vpow2.f32 %v635_v1  ;;  %v617_v0 = vsub.f32 %v1371_v48, %v1407_v44  ;;  %v655_v1 = vmul.f32 1.442695, %v615_v52 }
 0x1e1   :  { %1031 = vpow2.f32 %v637_v4  ;;  %v657_v15 = vmul.f32 1.442695, %v616_v59 }
 0x1e2   :  { %1033 = vpow2.f32 %v639_v12  ;;  %v618_v12 = vsub.f32 %v1368_v47, %v1407_v44 }
 0x1e3   :  { %1035 = vpow2.f32 %v641_v16 }
 0x1e4   :  { %1037 = vpow2.f32 %v643_v22  ;;  %v619_v22 = vsub.f32 %v1385_v57, %v1407_v44 }
 0x1e5   :  { %1039 = vpow2.f32 %v645_v30  ;;  %v620_v30 = vsub.f32 %v1382_v56, %v1407_v44 }
 0x1e6   :  { %1041 = vpow2.f32 %v647_v39  ;;  %v621_v39 = vsub.f32 %v1403_v18, %v1407_v44 }
 0x1e7   :  { %v1018_v17 = vpop.eup %1017  ;;  %1043 = vpow2.f32 %v649_v46  ;;  %v622_v46 = vsub.f32 %v1396_v2, %v1407_v44 }
 0x1e8   :  { %v1020_v23 = vpop.eup %1019  ;;  %v671_v25 = vsel %vm545_vm1, %v1018_v17, 0.0  ;;  %1045 = vpow2.f32 %v651_v53  ;;  %v667_v53 = vmul.f32 1.442695, %v621_v39 }
 0x1e9   :  { %v1022_v26 = vpop.eup %1021  ;;  %v672_v31 = vsel %vm545_vm1, %v1020_v23, 0.0  ;;  %1047 = vpow2.f32 %v653_v60  ;;  %v659_v23 = vmul.f32 1.442695, %v617_v0  ;;  %v669_v59 = vmul.f32 1.442695, %v622_v46 }
 0x1ea   :  { %v1024_v34 = vpop.eup %1023  ;;  %v673_v35 = vadd.f32 %v672_v31, %v671_v25  ;;  %v674_v40 = vsel %vm545_vm1, %v1022_v26, 0.0  ;;  %1049 = vpow2.f32 %v655_v1  ;;  %v661_v31 = vmul.f32 1.442695, %v618_v12 }
 0x1eb   :  { %v1026_v41 = vpop.eup %1025  ;;  %v676_v49 = vsel %vm545_vm1, %v1024_v34, 0.0  ;;  %1051 = vpow2.f32 %v657_v15 }
 0x1ec   :  { %v675_v43 = vadd.f32 %v674_v40, %v673_v35  ;;  %v1028_v50 = vpop.eup %1027  ;;  %v678_v54 = vsel %vm545_vm1, %v1026_v41, 0.0  ;;  %1053 = vpow2.f32 %v659_v23  ;;  %v663_v40 = vmul.f32 1.442695, %v619_v22 }
 0x1ed   :  { %v1030_v55 = vpop.eup %1029  ;;  %v680_v61 = vsel %vm545_vm1, %v1028_v50, 0.0  ;;  %1055 = vpow2.f32 %v661_v31 }
 0x1ee   :  { %v677_v51 = vadd.f32 %v676_v49, %v675_v43  ;;  %v1032_v62 = vpop.eup %1031  ;;  %v682_v3 = vsel %vm545_vm1, %v1030_v55, 0.0  ;;  %v665_v49 = vmul.f32 1.442695, %v620_v30  ;;  %1057 = vpow2.f32 %v663_v40 }
 0x1ef   :  { %v1034_v4 = vpop.eup %1033  ;;  %v684_v16 = vsel %vm545_vm1, %v1032_v62, 0.0 }
 0x1f0   :  { %v679_v58 = vadd.f32 %v678_v54, %v677_v51  ;;  %v1036_v17 = vpop.eup %1035  ;;  %v686_v25 = vsel %vm545_vm1, %v1034_v4, 0.0  ;;  %1059 = vpow2.f32 %v665_v49 }
 0x1f1   :  { %v1038_v26 = vpop.eup %1037  ;;  %v688_v34 = vsel %vm545_vm1, %v1036_v17, 0.0  ;;  %1061 = vpow2.f32 %v667_v53 }
 0x1f2   :  { %v681_v63 = vadd.f32 %v680_v61, %v679_v58  ;;  %v1040_v35 = vpop.eup %1039  ;;  %v690_v41 = vsel %vm545_vm1, %v1038_v26, 0.0  ;;  %1063 = vpow2.f32 %v669_v59 }
 0x1f3   :  { %v1042_v43 = vpop.eup %1041  ;;  %v692_v50 = vsel %vm545_vm1, %v1040_v35, 0.0 }
 0x1f4   :  { %v683_v6 = vadd.f32 %v682_v3, %v681_v63  ;;  %v1044_v51 = vpop.eup %1043  ;;  %v694_v54 = vsel %vm545_vm1, %v1042_v43, 0.0 }
 0x1f5   :  { %v1046_v55 = vpop.eup %1045  ;;  %v696_v60 = vsel %vm545_vm1, %v1044_v51, 0.0 }
 0x1f6   :  { %v685_v21 = vadd.f32 %v684_v16, %v683_v6  ;;  %v1048_v61 = vpop.eup %1047  ;;  %v698_v63 = vsel %vm545_vm1, %v1046_v55, 0.0 }
 0x1f7   :  { %v1050_v0 = vpop.eup %1049  ;;  %v700_v3 = vsel %vm545_vm1, %v1048_v61, 0.0 }
 0x1f8   :  { %v687_v27 = vadd.f32 %v686_v25, %v685_v21  ;;  %v1052_v4 = vpop.eup %1051  ;;  %v702_v12 = vsel %vm545_vm1, %v1050_v0, 0.0 }
 0x1f9   :  { %v1054_v15 = vpop.eup %1053  ;;  %v704_v17 = vsel %vm545_vm1, %v1052_v4, 0.0 }
 0x1fa   :  { %v689_v36 = vadd.f32 %v688_v34, %v687_v27  ;;  %v1056_v21 = vpop.eup %1055  ;;  %v706_v23 = vsel %vm545_vm1, %v1054_v15, 0.0 }
 0x1fb   :  { %v1058_v25 = vpop.eup %1057  ;;  %v708_v27 = vsel %vm545_vm1, %v1056_v21, 0.0 }
 0x1fc   :  { %v691_v45 = vadd.f32 %v690_v41, %v689_v36  ;;  %v710_v34 = vsel %vm545_vm1, %v1058_v25, 0.0 }
 0x1fd   :  { %v1060_v30 = vpop.eup %1059 }
 0x1fe   :  { %v693_v52 = vadd.f32 %v692_v50, %v691_v45  ;;  %v1062_v35 = vpop.eup %1061  ;;  %v712_v39 = vsel %vm545_vm1, %v1060_v30, 0.0 }
 0x1ff   :  { %v1064_v40 = vpop.eup %1063  ;;  %v714_v43 = vsel %vm545_vm1, %v1062_v35, 0.0 }
 0x200   :  { %v695_v58 = vadd.f32 %v694_v54, %v693_v52  ;;  %v716_v46 = vsel %vm545_vm1, %v1064_v40, 0.0 }
 0x202   :  { %v697_v62 = vadd.f32 %v696_v60, %v695_v58 }
 0x204   :  { %v699_v1 = vadd.f32 %v698_v63, %v697_v62 }
 0x206   :  { %v701_v6 = vadd.f32 %v700_v3, %v699_v1 }
 0x208   :  { %v703_v16 = vadd.f32 %v702_v12, %v701_v6 }
 0x20a   :  { %v705_v22 = vadd.f32 %v704_v17, %v703_v16 }
 0x20c   :  { %v707_v26 = vadd.f32 %v706_v23, %v705_v22 }
 0x20e   :  { %v709_v31 = vadd.f32 %v708_v27, %v707_v26 }
 0x210   :  { %v711_v36 = vadd.f32 %v710_v34, %v709_v31 }
 0x212   :  { %v713_v41 = vadd.f32 %v712_v39, %v711_v36 }
 0x214   :  { %v715_v45 = vadd.f32 %v714_v43, %v713_v41 }
 0x216   :  { %v717_v49 = vadd.f32 %v716_v46, %v715_v45 }
 0x218   :  { %v718_v50 = vrot.slane %v717_v49, 4 }
 0x21a   :  { %v719_v51 = vadd.f32 %v718_v50, %v717_v49 }
 0x21c   :  { %v720_v52 = vrot.slane %v719_v51, 2 }
 0x21e   :  { %v721_v53 = vadd.f32 %v720_v52, %v719_v51 }
 0x220   :  { %v722_v54 = vrot.slane %v721_v53, 1 }
 0x222   :  { %v723_v55 = vadd.f32 %v722_v54, %v721_v53 }
 0x224   :  { %1065 = vlog2.f32 %v723_v55 }
 0x231   :  { %v1066_v58 = vpop.eup %1065 }
 0x232   :  { %v725_v59 = vmul.f32 0.6931472, %v1066_v58 }
 0x234   :  { %v726_v60 = vadd.f32 %v725_v59, %v1407_v44 }
 0x236   :  { %v727_v61 = vsub.f32 %v1297_v9, %v726_v60  ;;  %v728_v62 = vsub.f32 %v1288_v5, %v726_v60  ;;  %v729_v63 = vsub.f32 %v1303_v11, %v726_v60  ;;  %v730_v0 = vsub.f32 %v1300_v10, %v726_v60 }
 0x237   :  { %v731_v1 = vsub.f32 %v1294_v8, %v726_v60  ;;  %v732_v3 = vsub.f32 %v1291_v7, %v726_v60  ;;  %v733_v4 = vsub.f32 %v1309_v14, %v726_v60  ;;  %v734_v6 = vsub.f32 %v1306_v13, %v726_v60 }
 0x238   :  { %v735_v12 = vsub.f32 %v1321_v20, %v726_v60  ;;  %v736_v44 = vsub.f32 %v1318_v19, %v726_v60  ;;  %v737_v9 = vsub.f32 %v1337_v28, %v726_v60  ;;  %v738_v5 = vsub.f32 %v1330_v24, %v726_v60  ;;  %751 = vst.msk [vmem:[%s1607_s5] sm:$0xff] %vm545_vm1, %v727_v61 }
 0x239   :  { %752 = vst.msk [vmem:[%s1607_s5 + $0x8] sm:$0xff] %vm545_vm1, %v728_v62  ;;  %753 = vst.msk [vmem:[%s1607_s5 + $0x10] sm:$0xff] %vm545_vm1, %v729_v63  ;;  %v739_v7 = vsub.f32 %v1340_v29, %v726_v60  ;;  %v740_v8 = vsub.f32 %v1343_v32, %v726_v60  ;;  %v741_v10 = vsub.f32 %v1353_v37, %v726_v60 }
 0x23a   :  { %754 = vst.msk [vmem:[%s1607_s5 + $0x18] sm:$0xff] %vm545_vm1, %v730_v0  ;;  %v742_v11 = vsub.f32 %v1346_v33, %v726_v60  ;;  %755 = vst.msk [vmem:[%s1607_s5 + $0x20] sm:$0xff] %vm545_vm1, %v731_v1  ;;  %v743_v13 = vsub.f32 %v1356_v38, %v726_v60  ;;  %v744_v14 = vsub.f32 %v1361_v42, %v726_v60 }
 0x23b   :  { %756 = vst.msk [vmem:[%s1607_s5 + $0x28] sm:$0xff] %vm545_vm1, %v732_v3  ;;  %757 = vst.msk [vmem:[%s1607_s5 + $0x30] sm:$0xff] %vm545_vm1, %v733_v4  ;;  %v745_v19 = vsub.f32 %v1371_v48, %v726_v60  ;;  %v746_v20 = vsub.f32 %v1368_v47, %v726_v60  ;;  %v747_v24 = vsub.f32 %v1385_v57, %v726_v60 }
 0x23c   :  { %758 = vst.msk [vmem:[%s1607_s5 + $0x38] sm:$0xff] %vm545_vm1, %v734_v6  ;;  %759 = vst.msk [vmem:[%s1607_s5 + $0x40] sm:$0xff] %vm545_vm1, %v735_v12  ;;  %v748_v28 = vsub.f32 %v1382_v56, %v726_v60  ;;  %v749_v29 = vsub.f32 %v1403_v18, %v726_v60  ;;  %v750_v32 = vsub.f32 %v1396_v2, %v726_v60 }
 0x23d   :  { %760 = vst.msk [vmem:[%s1607_s5 + $0x48] sm:$0xff] %vm545_vm1, %v736_v44  ;;  %761 = vst.msk [vmem:[%s1607_s5 + $0x50] sm:$0xff] %vm545_vm1, %v737_v9 }
 0x23e   :  { %762 = vst.msk [vmem:[%s1607_s5 + $0x58] sm:$0xff] %vm545_vm1, %v738_v5  ;;  %763 = vst.msk [vmem:[%s1607_s5 + $0x60] sm:$0xff] %vm545_vm1, %v739_v7 }
 0x23f   :  { %764 = vst.msk [vmem:[%s1607_s5 + $0x68] sm:$0xff] %vm545_vm1, %v740_v8  ;;  %765 = vst.msk [vmem:[%s1607_s5 + $0x70] sm:$0xff] %vm545_vm1, %v741_v10 }
 0x240   :  { %766 = vst.msk [vmem:[%s1607_s5 + $0x78] sm:$0xff] %vm545_vm1, %v742_v11  ;;  %767 = vst.msk [vmem:[%s1607_s5 + $0x80] sm:$0xff] %vm545_vm1, %v743_v13 }
 0x241   :  { %768 = vst.msk [vmem:[%s1607_s5 + $0x88] sm:$0xff] %vm545_vm1, %v744_v14  ;;  %769 = vst.msk [vmem:[%s1607_s5 + $0x90] sm:$0xff] %vm545_vm1, %v745_v19 }
 0x242   :  { %770 = vst.msk [vmem:[%s1607_s5 + $0x98] sm:$0xff] %vm545_vm1, %v746_v20  ;;  %771 = vst.msk [vmem:[%s1607_s5 + $0xa0] sm:$0xff] %vm545_vm1, %v747_v24 }
 0x243   :  { %772 = vst.msk [vmem:[%s1607_s5 + $0xa8] sm:$0xff] %vm545_vm1, %v748_v28  ;;  %773 = vst.msk [vmem:[%s1607_s5 + $0xb0] sm:$0xff] %vm545_vm1, %v749_v29 }
 0x244   :  { %774 = vst.msk [vmem:[%s1607_s5 + $0xb8] sm:$0xff] %vm545_vm1, %v750_v32 }

</bundles_post_ra>
